<compile_context>
chip_gen: v5e
topology: v5e:2x2
jax: 0.10.0
libtpu: 0.0.40
codegen_flags: <defaults>
</compile_context>

<pallas_src>
import functools

import jax
import jax.numpy as jnp
from jax.experimental import pallas as pl
from jax.experimental.pallas import tpu as pltpu  # noqa: F401  (for future batch tiling)


CONFIG = dict(
    vocab_size=50,
    embedding_size=32,          # word embedding dim for TextCNN
    seq_len=16,
    window_sizes=(3, 4, 5),     # TextCNN conv kernel sizes
    feature_size=32,            # conv out channels
    element_size=16,            # num element ids; element seq len = 16 // 2 = 8
    element_embedding_size=32,
    num_class=8,
)

VOCAB_PAD = 128   # one-hot contraction dim padded to a full 128-lane tile
OUT_PAD = 128     # fc output lanes padded so the final store is lane-dense


# ---------------------------------------------------------------------------
# Fused Pallas kernel: whole ModelWithElement forward pass
# ---------------------------------------------------------------------------
def _fused_model_kernel(
    x_ids_ref,     # (S*Bp, 1)   int32  token ids, time-major rows (t*Bp + b)
    e_ids_ref,     # (Le*Bp, 1)  int32  element ids, time-major rows
    wtab_ref,      # (Vp, T*F)   bf16   word_emb pre-fused into conv taps
    etab_ref,      # (Ne, F)     bf16   elem_emb pre-fused into k=1 conv
    act_b_ref,     # (1, IN)     f32    [b_conv0 | b_conv1 | b_conv2 | b_elem]
    fc_w_ref,      # (IN, 128)   f32    fc weight (lane-padded)
    fc_b_ref,      # (1, 128)    f32    fc bias   (lane-padded)
    out_ref,       # (Bp, 128)   f32
):
    cfg = CONFIG
    S = cfg["seq_len"]
    Le = cfg["element_size"] // 2
    F = cfg["feature_size"]
    windows = cfg["window_sizes"]

    SBp = x_ids_ref.shape[0]
    Bp = SBp // S
    Vp, _ = wtab_ref.shape
    Ne, _ = etab_ref.shape

    # ---- TextCNN branch: ONE lane-dense one-hot matmul against fused table --
    ids = x_ids_ref[...]                                            # (S*Bp, 1)
    oh = (jax.lax.broadcasted_iota(jnp.int32, (SBp, Vp), 1) == ids)
    oh = oh.astype(jnp.float32).astype(wtab_ref.dtype)              # exact 0/1
    taps = jnp.dot(oh, wtab_ref[...],
                   preferred_element_type=jnp.float32)              # (S*Bp, T*F)

    feats = []
    tap0 = 0
    for k in windows:
        L = S - k + 1
        # conv output at time t: sum over taps j of taps[t+j, block tap0+j];
        # time-major rows make each term a contiguous sublane-aligned slice.
        acc = taps[0:L * Bp, tap0 * F:(tap0 + 1) * F]
        for j in range(1, k):
            acc = acc + taps[j * Bp:(j + L) * Bp,
                             (tap0 + j) * F:(tap0 + j + 1) * F]      # (L*Bp, F)
        # max over the L valid time steps (Bp rows per step, 8-aligned slices)
        feats.append(functools.reduce(
            jnp.maximum, [acc[t * Bp:(t + 1) * Bp, :] for t in range(L)]))
        tap0 += k

    # ---- ElementCNN branch: k=1 conv folded into the table, one matmul -----
    eids = e_ids_ref[...]                                           # (Le*Bp, 1)
    eoh = (jax.lax.broadcasted_iota(jnp.int32, (Le * Bp, Ne), 1) == eids)
    eoh = eoh.astype(jnp.float32).astype(etab_ref.dtype)
    ez = jnp.dot(eoh, etab_ref[...],
                 preferred_element_type=jnp.float32)                # (Le*Bp, F)
    feats.append(functools.reduce(
        jnp.maximum, [ez[t * Bp:(t + 1) * Bp, :] for t in range(Le)]))

    # ---- bias + ReLU once on the lane-dense (Bp, 128) slab, then final fc --
    # relu(max_t z + b) == max_t relu(z + b): per-channel bias, ReLU monotone.
    feat = jnp.concatenate(feats, axis=1)                           # (Bp, IN)
    feat = jnp.maximum(feat + act_b_ref[...], 0.0)
    out_ref[...] = (jnp.dot(feat, fc_w_ref[...],
                            preferred_element_type=jnp.float32)
                    + fc_b_ref[...])                                # (Bp, 128)


# ---------------------------------------------------------------------------
# Parameter init: synthetic weights in native PyTorch layouts, then fused /
# padded into the kernel layout (this is where real checkpoint weights would
# be converted: Conv1d (F, E, k) per-tap -> (E, F); Linear (C, IN) -> (IN, C)).
# ---------------------------------------------------------------------------
def init_params(key, cfg):
    V, E = cfg["vocab_size"], cfg["embedding_size"]
    F, C = cfg["feature_size"], cfg["num_class"]
    Ne, Ee = cfg["element_size"], cfg["element_embedding_size"]
    windows = cfg["window_sizes"]
    IN = F * (len(windows) + 1)

    ks = list(jax.random.split(key, 16))

    # --- synthetic weights, PyTorch layouts ---------------------------------
    word_emb = jax.random.normal(ks[0], (V, E), jnp.float32) * 0.1      # nn.Embedding
    conv_w, conv_b = [], []
    for i, k in enumerate(windows):
        conv_w.append(jax.random.normal(ks[1 + 2 * i], (F, E, k),
                                        jnp.float32) * 0.05)            # Conv1d (out,in,k)
        conv_b.append(jax.random.normal(ks[2 + 2 * i], (F,), jnp.float32) * 0.01)
    elem_emb = jax.random.normal(ks[7], (Ne, Ee), jnp.float32) * 0.1
    elem_w = jax.random.normal(ks[8], (F, Ee, 1), jnp.float32) * 0.05    # Conv1d k=1
    elem_b = jax.random.normal(ks[9], (F,), jnp.float32) * 0.01
    fc_w = jax.random.normal(ks[10], (C, IN), jnp.float32) * 0.05        # nn.Linear (out,in)
    fc_b = jnp.zeros((C,), jnp.float32)

    # --- algebraic pre-fusion into kernel layout -----------------------------
    blocks = []
    for i, k in enumerate(windows):
        for j in range(k):
            blocks.append(word_emb @ conv_w[i][:, :, j].T)               # (V, F)
    wtab = jnp.concatenate(blocks, axis=1)                               # (V, T*F)
    wtab = jnp.zeros((VOCAB_PAD, wtab.shape[1]), jnp.float32).at[:V].set(wtab)

    etab = elem_emb @ elem_w[:, :, 0].T                                  # (Ne, F)

    act_b = jnp.concatenate(conv_b + [elem_b]).reshape(1, IN)            # slab order
    fc_wk = jnp.zeros((IN, OUT_PAD), jnp.float32).at[:, :C].set(fc_w.T)
    fc_bk = jnp.zeros((1, OUT_PAD), jnp.float32).at[:, :C].set(fc_b)

    return dict(
        word_tab=wtab.astype(jnp.bfloat16),    # MXU inputs bf16, one-hot lhs exact
        elem_tab=etab.astype(jnp.bfloat16),
        act_b=act_b,
        fc_w=fc_wk,
        fc_b=fc_bk,
    )


# ---------------------------------------------------------------------------
# Forward pass: ONE fused pallas_call (no grid needed at these toy sizes)
# ---------------------------------------------------------------------------
@jax.jit
def model_with_element_forward(params, x_ids, element_ids):
    cfg = CONFIG
    B, S = x_ids.shape
    Le = element_ids.shape[1]
    C = cfg["num_class"]
    F = cfg["feature_size"]
    IN = F * (len(cfg["window_sizes"]) + 1)
    Vp, TF = params["word_tab"].shape
    Ne = params["elem_tab"].shape[0]

    # pad batch to a sublane multiple so matmuls / stores are dense
    Bp = max(8, ((B + 7) // 8) * 8)
    x_p = jnp.pad(x_ids.astype(jnp.int32), ((0, Bp - B), (0, 0)))
    e_p = jnp.pad(element_ids.astype(jnp.int32), ((0, Bp - B), (0, 0)))
    # time-major flattening: row index = t * Bp + b
    x2 = x_p.T.reshape(S * Bp, 1)
    e2 = e_p.T.reshape(Le * Bp, 1)

    args = (x2, e2, params["word_tab"], params["elem_tab"],
            params["act_b"], params["fc_w"], params["fc_b"])

    flops = (2 * S * Bp * Vp * TF            # word one-hot matmul
             + 2 * Le * Bp * Ne * F          # element one-hot matmul
             + 2 * Bp * IN * OUT_PAD)        # final fc
    bytes_accessed = (sum(int(a.size) * a.dtype.itemsize for a in args)
                      + Bp * OUT_PAD * 4)

    out = pl.pallas_call(
        _fused_model_kernel,
        out_shape=jax.ShapeDtypeStruct((Bp, OUT_PAD), jnp.float32),
        cost_estimate=pl.CostEstimate(flops=flops, transcendentals=0,
                                      bytes_accessed=bytes_accessed),
    )(*args)
    return out[:B, :C]


# ---------------------------------------------------------------------------
if __name__ == "__main__":
    cfg = CONFIG
    B = 2
    key = jax.random.PRNGKey(0)
    kp, kx, ke = jax.random.split(key, 3)

    params = init_params(kp, cfg)
    # x: token id sequence (B, seq_len); element_vector: (B, element_size // 2)
    x_ids = jax.random.randint(
        kx, (B, cfg["seq_len"]), 0, cfg["vocab_size"], dtype=jnp.int32)
    element_ids = jax.random.randint(
        ke, (B, cfg["element_size"] // 2), 0, cfg["element_size"], dtype=jnp.int32)

    out = jax.block_until_ready(
        model_with_element_forward(params, x_ids, element_ids))
    assert out.shape == (B, cfg["num_class"]), out.shape
    assert out.dtype == jnp.float32
    assert bool(jnp.all(jnp.isfinite(out)))
    print("KERNEL_OK")
</pallas_src>

<mosaic_0001>
module attributes {stable_mosaic.version = 11 : i64} {
  func.func @_fused_model_kernel(%arg0: memref<128x1xi32, #tpu.memory_space<vmem>>, %arg1: memref<64x1xi32, #tpu.memory_space<vmem>>, %arg2: memref<128x384xbf16, #tpu.memory_space<vmem>>, %arg3: memref<16x32xbf16, #tpu.memory_space<vmem>>, %arg4: memref<1x128xf32, #tpu.memory_space<vmem>>, %arg5: memref<128x128xf32, #tpu.memory_space<vmem>>, %arg6: memref<1x128xf32, #tpu.memory_space<vmem>>, %arg7: memref<8x128xf32, #tpu.memory_space<vmem>>) attributes {dimension_semantics = [], scalar_prefetch = 0 : i64, scratch_operands = 0 : i64, tpu.core_type = #tpu.core_type<tc>} {
    %c0 = arith.constant 0 : index
    %c0_0 = arith.constant 0 : index
    %0 = vector.load %arg0[%c0, %c0_0] : memref<128x1xi32, #tpu.memory_space<vmem>>, vector<128x1xi32>
    %1 = tpu.iota {dimensions = array<i32: 1>} : vector<128x128xi32>
    %2 = vector.broadcast %0 : vector<128x1xi32> to vector<128x128xi32>
    %3 = arith.cmpi eq, %1, %2 : vector<128x128xi32>
    %4 = arith.extui %3 : vector<128x128xi1> to vector<128x128xi32>
    %5 = arith.sitofp %4 : vector<128x128xi32> to vector<128x128xf32>
    %6 = arith.truncf %5 : vector<128x128xf32> to vector<128x128xbf16>
    %c0_1 = arith.constant 0 : index
    %c0_2 = arith.constant 0 : index
    %7 = vector.load %arg2[%c0_1, %c0_2] : memref<128x384xbf16, #tpu.memory_space<vmem>>, vector<128x384xbf16>
    %cst = arith.constant dense<0.000000e+00> : vector<128x384xf32>
    %8 = tpu.matmul %6, %7, %cst {dimension_numbers = #tpu.dot_dimension_numbers<[1], [0], [0], [1], [0, 0, 1, 1], [], []>} : vector<128x128xbf16>, vector<128x384xbf16>, vector<128x384xf32> -> vector<128x384xf32>
    %9 = vector.extract_strided_slice %8 {offsets = [0, 0], sizes = [112, 32], strides = [1, 1]} : vector<128x384xf32> to vector<112x32xf32>
    %10 = vector.extract_strided_slice %8 {offsets = [8, 32], sizes = [112, 32], strides = [1, 1]} : vector<128x384xf32> to vector<112x32xf32>
    %11 = arith.addf %9, %10 : vector<112x32xf32>
    %12 = vector.extract_strided_slice %8 {offsets = [16, 64], sizes = [112, 32], strides = [1, 1]} : vector<128x384xf32> to vector<112x32xf32>
    %13 = arith.addf %11, %12 : vector<112x32xf32>
    %14 = vector.extract_strided_slice %13 {offsets = [0, 0], sizes = [8, 32], strides = [1, 1]} : vector<112x32xf32> to vector<8x32xf32>
    %15 = vector.extract_strided_slice %13 {offsets = [8, 0], sizes = [8, 32], strides = [1, 1]} : vector<112x32xf32> to vector<8x32xf32>
    %16 = vector.extract_strided_slice %13 {offsets = [16, 0], sizes = [8, 32], strides = [1, 1]} : vector<112x32xf32> to vector<8x32xf32>
    %17 = vector.extract_strided_slice %13 {offsets = [24, 0], sizes = [8, 32], strides = [1, 1]} : vector<112x32xf32> to vector<8x32xf32>
    %18 = vector.extract_strided_slice %13 {offsets = [32, 0], sizes = [8, 32], strides = [1, 1]} : vector<112x32xf32> to vector<8x32xf32>
    %19 = vector.extract_strided_slice %13 {offsets = [40, 0], sizes = [8, 32], strides = [1, 1]} : vector<112x32xf32> to vector<8x32xf32>
    %20 = vector.extract_strided_slice %13 {offsets = [48, 0], sizes = [8, 32], strides = [1, 1]} : vector<112x32xf32> to vector<8x32xf32>
    %21 = vector.extract_strided_slice %13 {offsets = [56, 0], sizes = [8, 32], strides = [1, 1]} : vector<112x32xf32> to vector<8x32xf32>
    %22 = vector.extract_strided_slice %13 {offsets = [64, 0], sizes = [8, 32], strides = [1, 1]} : vector<112x32xf32> to vector<8x32xf32>
    %23 = vector.extract_strided_slice %13 {offsets = [72, 0], sizes = [8, 32], strides = [1, 1]} : vector<112x32xf32> to vector<8x32xf32>
    %24 = vector.extract_strided_slice %13 {offsets = [80, 0], sizes = [8, 32], strides = [1, 1]} : vector<112x32xf32> to vector<8x32xf32>
    %25 = vector.extract_strided_slice %13 {offsets = [88, 0], sizes = [8, 32], strides = [1, 1]} : vector<112x32xf32> to vector<8x32xf32>
    %26 = vector.extract_strided_slice %13 {offsets = [96, 0], sizes = [8, 32], strides = [1, 1]} : vector<112x32xf32> to vector<8x32xf32>
    %27 = vector.extract_strided_slice %13 {offsets = [104, 0], sizes = [8, 32], strides = [1, 1]} : vector<112x32xf32> to vector<8x32xf32>
    %28 = arith.maximumf %14, %15 : vector<8x32xf32>
    %29 = arith.maximumf %28, %16 : vector<8x32xf32>
    %30 = arith.maximumf %29, %17 : vector<8x32xf32>
    %31 = arith.maximumf %30, %18 : vector<8x32xf32>
    %32 = arith.maximumf %31, %19 : vector<8x32xf32>
    %33 = arith.maximumf %32, %20 : vector<8x32xf32>
    %34 = arith.maximumf %33, %21 : vector<8x32xf32>
    %35 = arith.maximumf %34, %22 : vector<8x32xf32>
    %36 = arith.maximumf %35, %23 : vector<8x32xf32>
    %37 = arith.maximumf %36, %24 : vector<8x32xf32>
    %38 = arith.maximumf %37, %25 : vector<8x32xf32>
    %39 = arith.maximumf %38, %26 : vector<8x32xf32>
    %40 = arith.maximumf %39, %27 : vector<8x32xf32>
    %41 = vector.extract_strided_slice %8 {offsets = [0, 96], sizes = [104, 32], strides = [1, 1]} : vector<128x384xf32> to vector<104x32xf32>
    %42 = vector.extract_strided_slice %8 {offsets = [8, 128], sizes = [104, 32], strides = [1, 1]} : vector<128x384xf32> to vector<104x32xf32>
    %43 = arith.addf %41, %42 : vector<104x32xf32>
    %44 = vector.extract_strided_slice %8 {offsets = [16, 160], sizes = [104, 32], strides = [1, 1]} : vector<128x384xf32> to vector<104x32xf32>
    %45 = arith.addf %43, %44 : vector<104x32xf32>
    %46 = vector.extract_strided_slice %8 {offsets = [24, 192], sizes = [104, 32], strides = [1, 1]} : vector<128x384xf32> to vector<104x32xf32>
    %47 = arith.addf %45, %46 : vector<104x32xf32>
    %48 = vector.extract_strided_slice %47 {offsets = [0, 0], sizes = [8, 32], strides = [1, 1]} : vector<104x32xf32> to vector<8x32xf32>
    %49 = vector.extract_strided_slice %47 {offsets = [8, 0], sizes = [8, 32], strides = [1, 1]} : vector<104x32xf32> to vector<8x32xf32>
    %50 = vector.extract_strided_slice %47 {offsets = [16, 0], sizes = [8, 32], strides = [1, 1]} : vector<104x32xf32> to vector<8x32xf32>
    %51 = vector.extract_strided_slice %47 {offsets = [24, 0], sizes = [8, 32], strides = [1, 1]} : vector<104x32xf32> to vector<8x32xf32>
    %52 = vector.extract_strided_slice %47 {offsets = [32, 0], sizes = [8, 32], strides = [1, 1]} : vector<104x32xf32> to vector<8x32xf32>
    %53 = vector.extract_strided_slice %47 {offsets = [40, 0], sizes = [8, 32], strides = [1, 1]} : vector<104x32xf32> to vector<8x32xf32>
    %54 = vector.extract_strided_slice %47 {offsets = [48, 0], sizes = [8, 32], strides = [1, 1]} : vector<104x32xf32> to vector<8x32xf32>
    %55 = vector.extract_strided_slice %47 {offsets = [56, 0], sizes = [8, 32], strides = [1, 1]} : vector<104x32xf32> to vector<8x32xf32>
    %56 = vector.extract_strided_slice %47 {offsets = [64, 0], sizes = [8, 32], strides = [1, 1]} : vector<104x32xf32> to vector<8x32xf32>
    %57 = vector.extract_strided_slice %47 {offsets = [72, 0], sizes = [8, 32], strides = [1, 1]} : vector<104x32xf32> to vector<8x32xf32>
    %58 = vector.extract_strided_slice %47 {offsets = [80, 0], sizes = [8, 32], strides = [1, 1]} : vector<104x32xf32> to vector<8x32xf32>
    %59 = vector.extract_strided_slice %47 {offsets = [88, 0], sizes = [8, 32], strides = [1, 1]} : vector<104x32xf32> to vector<8x32xf32>
    %60 = vector.extract_strided_slice %47 {offsets = [96, 0], sizes = [8, 32], strides = [1, 1]} : vector<104x32xf32> to vector<8x32xf32>
    %61 = arith.maximumf %48, %49 : vector<8x32xf32>
    %62 = arith.maximumf %61, %50 : vector<8x32xf32>
    %63 = arith.maximumf %62, %51 : vector<8x32xf32>
    %64 = arith.maximumf %63, %52 : vector<8x32xf32>
    %65 = arith.maximumf %64, %53 : vector<8x32xf32>
    %66 = arith.maximumf %65, %54 : vector<8x32xf32>
    %67 = arith.maximumf %66, %55 : vector<8x32xf32>
    %68 = arith.maximumf %67, %56 : vector<8x32xf32>
    %69 = arith.maximumf %68, %57 : vector<8x32xf32>
    %70 = arith.maximumf %69, %58 : vector<8x32xf32>
    %71 = arith.maximumf %70, %59 : vector<8x32xf32>
    %72 = arith.maximumf %71, %60 : vector<8x32xf32>
    %73 = vector.extract_strided_slice %8 {offsets = [0, 224], sizes = [96, 32], strides = [1, 1]} : vector<128x384xf32> to vector<96x32xf32>
    %74 = vector.extract_strided_slice %8 {offsets = [8, 256], sizes = [96, 32], strides = [1, 1]} : vector<128x384xf32> to vector<96x32xf32>
    %75 = arith.addf %73, %74 : vector<96x32xf32>
    %76 = vector.extract_strided_slice %8 {offsets = [16, 288], sizes = [96, 32], strides = [1, 1]} : vector<128x384xf32> to vector<96x32xf32>
    %77 = arith.addf %75, %76 : vector<96x32xf32>
    %78 = vector.extract_strided_slice %8 {offsets = [24, 320], sizes = [96, 32], strides = [1, 1]} : vector<128x384xf32> to vector<96x32xf32>
    %79 = arith.addf %77, %78 : vector<96x32xf32>
    %80 = vector.extract_strided_slice %8 {offsets = [32, 352], sizes = [96, 32], strides = [1, 1]} : vector<128x384xf32> to vector<96x32xf32>
    %81 = arith.addf %79, %80 : vector<96x32xf32>
    %82 = vector.extract_strided_slice %81 {offsets = [0, 0], sizes = [8, 32], strides = [1, 1]} : vector<96x32xf32> to vector<8x32xf32>
    %83 = vector.extract_strided_slice %81 {offsets = [8, 0], sizes = [8, 32], strides = [1, 1]} : vector<96x32xf32> to vector<8x32xf32>
    %84 = vector.extract_strided_slice %81 {offsets = [16, 0], sizes = [8, 32], strides = [1, 1]} : vector<96x32xf32> to vector<8x32xf32>
    %85 = vector.extract_strided_slice %81 {offsets = [24, 0], sizes = [8, 32], strides = [1, 1]} : vector<96x32xf32> to vector<8x32xf32>
    %86 = vector.extract_strided_slice %81 {offsets = [32, 0], sizes = [8, 32], strides = [1, 1]} : vector<96x32xf32> to vector<8x32xf32>
    %87 = vector.extract_strided_slice %81 {offsets = [40, 0], sizes = [8, 32], strides = [1, 1]} : vector<96x32xf32> to vector<8x32xf32>
    %88 = vector.extract_strided_slice %81 {offsets = [48, 0], sizes = [8, 32], strides = [1, 1]} : vector<96x32xf32> to vector<8x32xf32>
    %89 = vector.extract_strided_slice %81 {offsets = [56, 0], sizes = [8, 32], strides = [1, 1]} : vector<96x32xf32> to vector<8x32xf32>
    %90 = vector.extract_strided_slice %81 {offsets = [64, 0], sizes = [8, 32], strides = [1, 1]} : vector<96x32xf32> to vector<8x32xf32>
    %91 = vector.extract_strided_slice %81 {offsets = [72, 0], sizes = [8, 32], strides = [1, 1]} : vector<96x32xf32> to vector<8x32xf32>
    %92 = vector.extract_strided_slice %81 {offsets = [80, 0], sizes = [8, 32], strides = [1, 1]} : vector<96x32xf32> to vector<8x32xf32>
    %93 = vector.extract_strided_slice %81 {offsets = [88, 0], sizes = [8, 32], strides = [1, 1]} : vector<96x32xf32> to vector<8x32xf32>
    %94 = arith.maximumf %82, %83 : vector<8x32xf32>
    %95 = arith.maximumf %94, %84 : vector<8x32xf32>
    %96 = arith.maximumf %95, %85 : vector<8x32xf32>
    %97 = arith.maximumf %96, %86 : vector<8x32xf32>
    %98 = arith.maximumf %97, %87 : vector<8x32xf32>
    %99 = arith.maximumf %98, %88 : vector<8x32xf32>
    %100 = arith.maximumf %99, %89 : vector<8x32xf32>
    %101 = arith.maximumf %100, %90 : vector<8x32xf32>
    %102 = arith.maximumf %101, %91 : vector<8x32xf32>
    %103 = arith.maximumf %102, %92 : vector<8x32xf32>
    %104 = arith.maximumf %103, %93 : vector<8x32xf32>
    %c0_3 = arith.constant 0 : index
    %c0_4 = arith.constant 0 : index
    %105 = vector.load %arg1[%c0_3, %c0_4] : memref<64x1xi32, #tpu.memory_space<vmem>>, vector<64x1xi32>
    %106 = tpu.iota {dimensions = array<i32: 1>} : vector<64x16xi32>
    %107 = vector.broadcast %105 : vector<64x1xi32> to vector<64x16xi32>
    %108 = arith.cmpi eq, %106, %107 : vector<64x16xi32>
    %109 = arith.extui %108 : vector<64x16xi1> to vector<64x16xi32>
    %110 = arith.sitofp %109 : vector<64x16xi32> to vector<64x16xf32>
    %111 = arith.truncf %110 : vector<64x16xf32> to vector<64x16xbf16>
    %c0_5 = arith.constant 0 : index
    %c0_6 = arith.constant 0 : index
    %112 = vector.load %arg3[%c0_5, %c0_6] : memref<16x32xbf16, #tpu.memory_space<vmem>>, vector<16x32xbf16>
    %cst_7 = arith.constant dense<0.000000e+00> : vector<64x32xf32>
    %113 = tpu.matmul %111, %112, %cst_7 {dimension_numbers = #tpu.dot_dimension_numbers<[1], [0], [0], [1], [0, 0, 1, 1], [], []>} : vector<64x16xbf16>, vector<16x32xbf16>, vector<64x32xf32> -> vector<64x32xf32>
    %114 = vector.extract_strided_slice %113 {offsets = [0, 0], sizes = [8, 32], strides = [1, 1]} : vector<64x32xf32> to vector<8x32xf32>
    %115 = vector.extract_strided_slice %113 {offsets = [8, 0], sizes = [8, 32], strides = [1, 1]} : vector<64x32xf32> to vector<8x32xf32>
    %116 = vector.extract_strided_slice %113 {offsets = [16, 0], sizes = [8, 32], strides = [1, 1]} : vector<64x32xf32> to vector<8x32xf32>
    %117 = vector.extract_strided_slice %113 {offsets = [24, 0], sizes = [8, 32], strides = [1, 1]} : vector<64x32xf32> to vector<8x32xf32>
    %118 = vector.extract_strided_slice %113 {offsets = [32, 0], sizes = [8, 32], strides = [1, 1]} : vector<64x32xf32> to vector<8x32xf32>
    %119 = vector.extract_strided_slice %113 {offsets = [40, 0], sizes = [8, 32], strides = [1, 1]} : vector<64x32xf32> to vector<8x32xf32>
    %120 = vector.extract_strided_slice %113 {offsets = [48, 0], sizes = [8, 32], strides = [1, 1]} : vector<64x32xf32> to vector<8x32xf32>
    %121 = vector.extract_strided_slice %113 {offsets = [56, 0], sizes = [8, 32], strides = [1, 1]} : vector<64x32xf32> to vector<8x32xf32>
    %122 = arith.maximumf %114, %115 : vector<8x32xf32>
    %123 = arith.maximumf %122, %116 : vector<8x32xf32>
    %124 = arith.maximumf %123, %117 : vector<8x32xf32>
    %125 = arith.maximumf %124, %118 : vector<8x32xf32>
    %126 = arith.maximumf %125, %119 : vector<8x32xf32>
    %127 = arith.maximumf %126, %120 : vector<8x32xf32>
    %128 = arith.maximumf %127, %121 : vector<8x32xf32>
    %129 = tpu.concatenate %40, %72, %104, %128 in 1 : vector<8x32xf32>, vector<8x32xf32>, vector<8x32xf32>, vector<8x32xf32> -> vector<8x128xf32>
    %c0_8 = arith.constant 0 : index
    %c0_9 = arith.constant 0 : index
    %130 = vector.load %arg4[%c0_8, %c0_9] : memref<1x128xf32, #tpu.memory_space<vmem>>, vector<1x128xf32>
    %131 = vector.broadcast %130 : vector<1x128xf32> to vector<8x128xf32>
    %132 = arith.addf %129, %131 : vector<8x128xf32>
    %cst_10 = arith.constant 0.000000e+00 : f32
    %133 = vector.broadcast %cst_10 : f32 to vector<8x128xf32>
    %134 = arith.maximumf %132, %133 : vector<8x128xf32>
    %c0_11 = arith.constant 0 : index
    %c0_12 = arith.constant 0 : index
    %135 = vector.load %arg5[%c0_11, %c0_12] : memref<128x128xf32, #tpu.memory_space<vmem>>, vector<128x128xf32>
    %cst_13 = arith.constant dense<0.000000e+00> : vector<8x128xf32>
    %136 = tpu.matmul %134, %135, %cst_13 {dimension_numbers = #tpu.dot_dimension_numbers<[1], [0], [0], [1], [0, 0, 1, 1], [], []>} : vector<8x128xf32>, vector<128x128xf32>, vector<8x128xf32> -> vector<8x128xf32>
    %c0_14 = arith.constant 0 : index
    %c0_15 = arith.constant 0 : index
    %137 = vector.load %arg6[%c0_14, %c0_15] : memref<1x128xf32, #tpu.memory_space<vmem>>, vector<1x128xf32>
    %138 = vector.broadcast %137 : vector<1x128xf32> to vector<8x128xf32>
    %139 = arith.addf %136, %138 : vector<8x128xf32>
    %c0_16 = arith.constant 0 : index
    %c0_17 = arith.constant 0 : index
    %140 = vector.load %arg7[%c0_16, %c0_17] : memref<8x128xf32, #tpu.memory_space<vmem>>, vector<8x128xf32>
    tpu.vector_store %arg7[%c0_16, %c0_17], %139 {strides = array<i32>} : memref<8x128xf32, #tpu.memory_space<vmem>>, vector<8x128xf32>,
    return
  }
}

</mosaic_0001>

<bundles_post_ra>
// kernel: model_with_element_forward.1
= control target key start
LH: loop header
LB: loop body
LE: loop exit
PB: predicated region body
PF: predicated region fallthrough
CT: control target
= control target key end

     0   :  { %12 = vsyncpa [#allocation3], 0  ;;  %s1403_s27 = smov [#allocation2]   ;;  %s1404_s29 = smov 128   ;;  %s2164_s0 = inlined_call_operand.vmem [shape: s32[128,1], index: 0, kind: input, shape index: {}]   ;;  %s2165_s1 = inlined_call_operand.vmem [shape: s32[64,1], index: 1, kind: input, shape index: {}]   ;;  %s2166_s2 = inlined_call_operand.vmem [shape: bf16[128,384], index: 2, kind: input, shape index: {}]   ;;  %s2167_s3 = inlined_call_operand.vmem [shape: bf16[16,32], index: 3, kind: input, shape index: {}]   ;;  %s2168_s4 = inlined_call_operand.vmem [shape: f32[1,128], index: 4, kind: input, shape index: {}]   ;;  %s2169_s5 = inlined_call_operand.hbm [shape: f32[128,128], index: 5, kind: input, shape index: {}]   ;;  %s2170_s6 = inlined_call_operand.vmem [shape: f32[1,128], index: 6, kind: input, shape index: {}]   ;;  %s2171_s7 = inlined_call_operand.vmem [shape: f32[8,128], index: 7, kind: output, shape index: {}]  }
   0x1   :  { %s27_s26 = sshll.u32 %s2169_s5, 4  ;;  %s29_s28 = sshll.u32 %s1403_s27, 4  ;;  %s28_s26 = int_to_ptr.hbm [resolvable:$true] %s27_s26  ;;  %s30_s28 = int_to_ptr.vmem [resolvable:$true] %s29_s28 }
   0x2   :  { %s1405_s30 = smov 8  }
   0x3   :  { %35 = dma.hbm_to_vmem [thread:$0]  %s28_s26, 2048, %s30_s28, [#allocation3], %s1404_s29, %s1404_s29, %s1405_s30  }
   0x4   :  { %1401 = dma.done.wait [#allocation3], 2048  }
   0x5   :  { %1402 = vsyncadd [#allocation3], 4294965248  ;;  %v1406_v0 = vmov 0   ;;  %v45_v1 = vld [vmem:[%s2164_s0 + $0x10] sm:$0xff]  ;;  %v43_v2 = vld [vmem:[%s2164_s0] sm:$0xff]  ;;  %vm1043_vm14 = vcmask 130048  }
   0x6   :  { %1373 = vset.pattern.permute.xlu1 %v1406_v0  ;;  %1372 = vset.pattern.permute.xlu0 %v1406_v0  ;;  %v47_v3 = vld [vmem:[%s2164_s0 + $0x20] sm:$0xff]  ;;  %v46_v4 = vld [vmem:[%s2164_s0 + $0x18] sm:$0xff]  ;;  %v44_v5 = vld [vmem:[%s2164_s0 + $0x8] sm:$0xff]  ;;  %s1410_s26 = smov 64   ;;  %s1411_s27 = smov 32  }
   0x7   :  { %1374 = vset.pattern.permute.xlu2 %v1406_v0  ;;  %68 = vperm.xlu1 %1373, %v45_v1   ;;  %v48_v6 = vld [vmem:[%s2164_s0 + $0x28] sm:$0xff]  ;;  %v50_v7 = vld [vmem:[%s2164_s0 + $0x38] sm:$0xff]  ;;  %v49_v8 = vld [vmem:[%s2164_s0 + $0x30] sm:$0xff] }
   0x8   :  { %62 = vperm.xlu0 %1372, %v43_v2   ;;  %74 = vperm.xlu2 %1374, %v47_v3   ;;  %v51_v9 = vld [vmem:[%s2164_s0 + $0x40] sm:$0xff]  ;;  %v53_v10 = vld [vmem:[%s2164_s0 + $0x50] sm:$0xff]  ;;  %v52_v11 = vld [vmem:[%s2164_s0 + $0x48] sm:$0xff] }
   0x9   :  { %v54_v12 = vld [vmem:[%s2164_s0 + $0x58] sm:$0xff]  ;;  %v1264_v13 = vld [vmem:[%s2166_s2 + $0xa8] sm:$0xf]  ;;  %v1360_v14 = vld [vmem:[%s2166_s2 + $0xb0] sm:$0xf0] }
   0xa   :  { %v1359_v15 = vld [vmem:[%s2166_s2 + $0xac] sm:$0xf]  ;;  %v1265_v16 = vor.u32 %v1360_v14, %v1264_v13  ;;  %v1266_v17 = vld [vmem:[%s2166_s2 + $0xb4] sm:$0xf0]  ;;  %v1272_v18 = vld [vmem:[%s2166_s2 + $0xb0] sm:$0xf] }
   0xb   :  { %v1361_v19 = vld [vmem:[%s2166_s2 + $0xb8] sm:$0xf0]  ;;  %v1269_v20 = vor.u32 %v1359_v15, %v1266_v17  ;;  %v1252_v22 = vld [vmem:[%s2166_s2 + $0x90] sm:$0xf]  ;;  %v1356_v24 = vld [vmem:[%s2166_s2 + $0x94] sm:$0xf] }
   0xc   :  { %v1273_v21 = vor.u32 %v1361_v19, %v1272_v18  ;;  %v1357_v23 = vld [vmem:[%s2166_s2 + $0x98] sm:$0xf0]  ;;  %325 = vmatpush.bf16.msra.mxu0 %v1265_v16  ;;  %v1254_v25 = vld [vmem:[%s2166_s2 + $0x9c] sm:$0xf0]  ;;  %v1260_v26 = vld [vmem:[%s2166_s2 + $0x98] sm:$0xf] }
   0xd   :  { %v1358_v27 = vld [vmem:[%s2166_s2 + $0xa0] sm:$0xf0]  ;;  %v56_v28 = vld [vmem:[%s2164_s0 + $0x68] sm:$0xff]  ;;  %374 = vmatpush.bf16.msra.mxu1 %v1269_v20  ;;  %v1253_v31 = vor.u32 %v1357_v23, %v1252_v22  ;;  %v1257_v32 = vor.u32 %v1356_v24, %v1254_v25  ;;  %v1240_v34 = vld [vmem:[%s2166_s2 + $0x78] sm:$0xf] }
   0xe   :  { %v55_v29 = vld [vmem:[%s2164_s0 + $0x60] sm:$0xff]  ;;  %423 = vmatpush.bf16.msra.mxu2 %v1273_v21  ;;  %v1261_v33 = vor.u32 %v1358_v27, %v1260_v26  ;;  %v1353_v36 = vld [vmem:[%s2166_s2 + $0x7c] sm:$0xf]  ;;  %v1242_v37 = vld [vmem:[%s2166_s2 + $0x84] sm:$0xf0] }
   0xf   :  { %71 = vperm.xlu1 %1373, %v46_v4   ;;  %v975_v30 = vld [vmem:[%s2165_s1] sm:$0xff]  ;;  %v1355_v39 = vld [vmem:[%s2166_s2 + $0x88] sm:$0xf0]  ;;  %v1245_v41 = vor.u32 %v1353_v36, %v1242_v37  ;;  %v57_v43 = vld [vmem:[%s2164_s0 + $0x70] sm:$0xff]  ;;  %v59_v36 = vlaneseq }
  0x10   :  { %65 = vperm.xlu0 %1372, %v44_v5   ;;  %77 = vperm.xlu2 %1374, %v48_v6   ;;  %v1354_v35 = vld [vmem:[%s2166_s2 + $0x80] sm:$0xf0]  ;;  %v1248_v38 = vld [vmem:[%s2166_s2 + $0x80] sm:$0xf]  ;;  %v976_v44 = vld [vmem:[%s2165_s1 + $0x8] sm:$0xff] }
  0x11   :  { %326 = vmatpush.bf16.msra.mxu0 %v1253_v31  ;;  %v1241_v40 = vor.u32 %v1354_v35, %v1240_v34  ;;  %375 = vmatpush.bf16.msra.mxu1 %v1257_v32  ;;  %v1249_v42 = vor.u32 %v1355_v39, %v1248_v38  ;;  %v58_v45 = vld [vmem:[%s2164_s0 + $0x78] sm:$0xff]  ;;  %v977_v47 = vld [vmem:[%s2165_s1 + $0x10] sm:$0xff]  ;;  %v979_v48 = vld [vmem:[%s2165_s1 + $0x20] sm:$0xff]  ;;  %v1671_v38 = vand.u32 127, %v59_v36 }
  0x12   :  { %424 = vmatpush.bf16.msra.mxu2 %v1261_v33  ;;  %v978_v46 = vld [vmem:[%s2165_s1 + $0x18] sm:$0xff]  ;;  %v981_v49 = vld [vmem:[%s2165_s1 + $0x30] sm:$0xff]  ;;  %v980_v50 = vld [vmem:[%s2165_s1 + $0x28] sm:$0xff] }
  0x13   :  { %v982_v51 = vld [vmem:[%s2165_s1 + $0x38] sm:$0xff]  ;;  %v1228_v52 = vld [vmem:[%s2166_s2 + $0x60] sm:$0xf]  ;;  %v1351_v53 = vld [vmem:[%s2166_s2 + $0x68] sm:$0xf0] }
  0x14   :  { %v1350_v54 = vld [vmem:[%s2166_s2 + $0x64] sm:$0xf]  ;;  %v1229_v55 = vor.u32 %v1351_v53, %v1228_v52  ;;  %v1230_v56 = vld [vmem:[%s2166_s2 + $0x6c] sm:$0xf0]  ;;  %v1236_v57 = vld [vmem:[%s2166_s2 + $0x68] sm:$0xf] }
  0x15   :  { %327 = vmatpush.bf16.msra.mxu0 %v1241_v40  ;;  %376 = vmatpush.bf16.msra.mxu1 %v1245_v41  ;;  %v1352_v58 = vld [vmem:[%s2166_s2 + $0x70] sm:$0xf0]  ;;  %v1233_v59 = vor.u32 %v1350_v54, %v1230_v56  ;;  %v1216_v61 = vld [vmem:[%s2166_s2 + $0x48] sm:$0xf]  ;;  %v1347_v63 = vld [vmem:[%s2166_s2 + $0x4c] sm:$0xf] }
  0x16   :  { %425 = vmatpush.bf16.msra.mxu2 %v1249_v42  ;;  %v1237_v60 = vor.u32 %v1352_v58, %v1236_v57  ;;  %v1348_v62 = vld [vmem:[%s2166_s2 + $0x50] sm:$0xf0]  ;;  %v1218_v1 = vld [vmem:[%s2166_s2 + $0x54] sm:$0xf0]  ;;  %v1224_v2 = vld [vmem:[%s2166_s2 + $0x50] sm:$0xf] }
  0x17   :  { %83 = vperm.xlu1 %1373, %v50_v7   ;;  %v1217_v0 = vor.u32 %v1348_v62, %v1216_v61  ;;  %v1349_v3 = vld [vmem:[%s2166_s2 + $0x58] sm:$0xf0]  ;;  %v1221_v4 = vor.u32 %v1347_v63, %v1218_v1  ;;  %v1204_v6 = vld [vmem:[%s2166_s2 + $0x30] sm:$0xf]  ;;  %v1192_v15 = vld [vmem:[%s2166_s2 + $0x18] sm:$0xf] }
  0x18   :  { %80 = vperm.xlu0 %1372, %v49_v8   ;;  %86 = vperm.xlu2 %1374, %v51_v9   ;;  %v1225_v5 = vor.u32 %v1349_v3, %v1224_v2  ;;  %v1345_v7 = vld [vmem:[%s2166_s2 + $0x38] sm:$0xf0]  ;;  %v1344_v8 = vld [vmem:[%s2166_s2 + $0x34] sm:$0xf]  ;;  %v1342_v16 = vld [vmem:[%s2166_s2 + $0x20] sm:$0xf0] }
  0x19   :  { %328 = vmatpush.bf16.msra.mxu0 %v1229_v55  ;;  %377 = vmatpush.bf16.msra.mxu1 %v1233_v59  ;;  %v1205_v9 = vor.u32 %v1345_v7, %v1204_v6  ;;  %v1341_v17 = vld [vmem:[%s2166_s2 + $0x1c] sm:$0xf]  ;;  %v1193_v18 = vor.u32 %v1342_v16, %v1192_v15  ;;  %v1194_v19 = vld [vmem:[%s2166_s2 + $0x24] sm:$0xf0]  ;;  %v1200_v20 = vld [vmem:[%s2166_s2 + $0x20] sm:$0xf] }
  0x1a   :  { %426 = vmatpush.bf16.msra.mxu2 %v1237_v60  ;;  %v1343_v21 = vld [vmem:[%s2166_s2 + $0x28] sm:$0xf0]  ;;  %v1197_v22 = vor.u32 %v1341_v17, %v1194_v19  ;;  %v1180_v24 = vld [vmem:[%s2166_s2] sm:$0xf]  ;;  %v1338_v26 = vld [vmem:[%s2166_s2 + $0x4] sm:$0xf] }
  0x1b   :  { %v1201_v23 = vor.u32 %v1343_v21, %v1200_v20  ;;  %v1339_v25 = vld [vmem:[%s2166_s2 + $0x8] sm:$0xf0]  ;;  %v1362_v41 = vld [vmem:[%s2167_s3] sm:$0xff]  ;;  %v1407_v42 = vmov 1.0|1.0   ;;  %v1408_v53 = vmov 0.0  }
  0x1c   :  { %v1181_v27 = vor.u32 %v1339_v25, %v1180_v24  ;;  %1063 = vmatpush.bf16.msra.mxu3 %v1362_v41  ;;  %s1409_s3 = smov 96  }
  0x1d   :  { %329 = vmatpush.bf16.msra.mxu0 %v1217_v0  ;;  %378 = vmatpush.bf16.msra.mxu1 %v1221_v4 }
  0x1e   :  { %427 = vmatpush.bf16.msra.mxu2 %v1225_v5 }
  0x1f   :  { %92 = vperm.xlu1 %1373, %v53_v10   ;;  %v1206_v10 = vld [vmem:[%s2166_s2 + $0x3c] sm:$0xf0] }
  0x20   :  { %89 = vperm.xlu0 %1372, %v52_v11   ;;  %95 = vperm.xlu2 %1374, %v54_v12   ;;  %v1212_v11 = vld [vmem:[%s2166_s2 + $0x38] sm:$0xf]  ;;  %v1346_v12 = vld [vmem:[%s2166_s2 + $0x40] sm:$0xf0]  ;;  %v1209_v13 = vor.u32 %v1344_v8, %v1206_v10 }
  0x21   :  { %v1213_v14 = vor.u32 %v1346_v12, %v1212_v11  ;;  %330 = vmatpush.bf16.msra.mxu0 %v1205_v9 }
  0x22   :  { %379 = vmatpush.bf16.msra.mxu1 %v1209_v13 }
  0x23   :  { %428 = vmatpush.bf16.msra.mxu2 %v1213_v14 }
  0x25   :  { %331 = vmatpush.bf16.msra.mxu0 %v1193_v18 }
  0x26   :  { %380 = vmatpush.bf16.msra.mxu1 %v1197_v22 }
  0x27   :  { %101 = vperm.xlu1 %1373, %v56_v28   ;;  %v1182_v28 = vld [vmem:[%s2166_s2 + $0xc] sm:$0xf0]  ;;  %429 = vmatpush.bf16.msra.mxu2 %v1201_v23 }
  0x28   :  { %98 = vperm.xlu0 %1372, %v55_v29   ;;  %984 = vperm.xlu2 %1374, %v975_v30   ;;  %v1188_v29 = vld [vmem:[%s2166_s2 + $0x8] sm:$0xf]  ;;  %v1340_v30 = vld [vmem:[%s2166_s2 + $0x10] sm:$0xf0]  ;;  %v1185_v31 = vor.u32 %v1338_v26, %v1182_v28 }
  0x29   :  { %v1189_v32 = vor.u32 %v1340_v30, %v1188_v29  ;;  %332 = vmatpush.bf16.msra.mxu0 %v1181_v27 }
  0x2a   :  { %381 = vmatpush.bf16.msra.mxu1 %v1185_v31 }
  0x2b   :  { %430 = vmatpush.bf16.msra.mxu2 %v1189_v32 }
  0x2f   :  { %104 = vperm.xlu1 %1373, %v57_v43  }
  0x30   :  { %987 = vperm.xlu0 %1372, %v976_v44   ;;  %107 = vperm.xlu2 %1374, %v58_v45  }
  0x37   :  { %993 = vperm.xlu1 %1373, %v978_v46  }
  0x38   :  { %990 = vperm.xlu0 %1372, %v977_v47   ;;  %996 = vperm.xlu2 %1374, %v979_v48  }
  0x3f   :  { %1002 = vperm.xlu1 %1373, %v981_v49  }
  0x40   :  { %999 = vperm.xlu0 %1372, %v980_v50   ;;  %1005 = vperm.xlu2 %1374, %v982_v51  }
  0x62   :  { %v75_v33 = vpop.permute.xlu2 %74 }
  0x63   :  { %vm113_vm10 = vcmp.eq.s32.totalorder %v1671_v38, %v75_v33 }
  0x6a   :  { %v78_v37 = vpop.permute.xlu2 %77 }
  0x6b   :  { %vm114_vm11 = vcmp.eq.s32.totalorder %v1671_v38, %v78_v37 }
  0x6c   :  { %vm1278_vm12 = vmpackc.low %vm114_vm11, %vm113_vm10 }
  0x72   :  { %v87_v43 = vpop.permute.xlu2 %86 }
  0x79   :  { %v69_v34 = vpop.permute.xlu1 %68 }
  0x7a   :  { %v63_v35 = vpop.permute.xlu0 %62  ;;  %vm111_vm3 = vcmp.eq.s32.totalorder %v1671_v38, %v69_v34  ;;  %v1685_v48 = vpop.permute.xlu2 %95 }
  0x7b   :  { %vm109_vm1 = vcmp.eq.s32.totalorder %v1671_v38, %v63_v35 }
  0x81   :  { %v72_v39 = vpop.permute.xlu1 %71 }
  0x82   :  { %v66_v40 = vpop.permute.xlu0 %65  ;;  %vm112_vm4 = vcmp.eq.s32.totalorder %v1671_v38, %v72_v39  ;;  %v985_v52 = vpop.permute.xlu2 %984 }
  0x83   :  { %vm110_vm0 = vcmp.eq.s32.totalorder %v1671_v38, %v66_v40  ;;  %vm1276_vm5 = vmpackc.low %vm112_vm4, %vm111_vm3  ;;  %vm1007_vm9 = vcmp.eq.s32.totalorder %v1671_v38, %v985_v52 }
  0x84   :  { %vm1274_vm2 = vmpackc.low %vm110_vm0, %vm109_vm1  ;;  %v1322_v54 = vsel %vm1007_vm9, 1.0, %v1408_v53 }
  0x85   :  { %1275 = vmatmul.msk.bf16.vlgmr.msra.gmra.mxu0 %vm1274_vm2, %v1407_v42  ;;  %1291 = vmatmul.msk.bf16.vlgmr.msra.gmra.mxu1 %vm1274_vm2, %v1407_v42 }
  0x86   :  { %1307 = vmatmul.msk.bf16.vlgmr.msra.gmra.mxu2 %vm1274_vm2, %v1407_v42 }
  0x89   :  { %v84_v44 = vpop.permute.xlu1 %83 }
  0x8a   :  { %v81_v45 = vpop.permute.xlu0 %80  ;;  %vm116_vm1 = vcmp.eq.s32.totalorder %v1671_v38, %v84_v44  ;;  %v108_v0 = vpop.permute.xlu2 %107 }
  0x8b   :  { %vm115_vm2 = vcmp.eq.s32.totalorder %v1671_v38, %v81_v45 }
  0x8c   :  { %vm1280_vm3 = vmpackc.low %vm116_vm1, %vm115_vm2 }
  0x91   :  { %v1683_v46 = vpop.permute.xlu1 %92 }
  0x92   :  { %v90_v47 = vpop.permute.xlu0 %89  ;;  %v997_v2 = vpop.permute.xlu2 %996 }
  0x95   :  { %1277 = vmatmul.msk.bf16.gmra.mxu0 %vm1276_vm5, %v1407_v42  ;;  %1293 = vmatmul.msk.bf16.gmra.mxu1 %vm1276_vm5, %v1407_v42 }
  0x96   :  { %1309 = vmatmul.msk.bf16.gmra.mxu2 %vm1276_vm5, %v1407_v42  ;;  %vm1011_vm5 = vcmp.eq.s32.totalorder %v1671_v38, %v997_v2 }
  0x97   :  { %v1326_v4 = vsel %vm1011_vm5, 1.0, %v1408_v53 }
  0x99   :  { %v102_v49 = vpop.permute.xlu1 %101 }
  0x9a   :  { %v99_v50 = vpop.permute.xlu0 %98  ;;  %vm122_vm6 = vcmp.eq.s32.totalorder %v1671_v38, %v102_v49  ;;  %v1006_v7 = vpop.permute.xlu2 %1005 }
  0x9b   :  { %vm121_vm7 = vcmp.eq.s32.totalorder %v1671_v38, %v99_v50  ;;  %vm1014_vm11 = vcmp.eq.s32.totalorder %v1671_v38, %v1006_v7 }
  0x9c   :  { %vm1692_vm8 = vmpackc.low %vm122_vm6, %vm121_vm7  ;;  %vm117_vm6 = vcmp.eq.s32.totalorder %v1671_v38, %v87_v43  ;;  %vm118_vm7 = vcmp.eq.s32.totalorder %v1671_v38, %v90_v47  ;;  %v1329_v9 = vsel %vm1014_vm11, 1.0, %v1408_v53 }
  0x9d   :  { %vm1282_vm9 = vmpackc.low %vm118_vm7, %vm117_vm6 }
  0xa1   :  { %v105_v55 = vpop.permute.xlu1 %104 }
  0xa2   :  { %v988_v56 = vpop.permute.xlu0 %987  ;;  %vm123_vm1 = vcmp.eq.s32.totalorder %v1671_v38, %v105_v55 }
  0xa3   :  { %vm1008_vm13 = vcmp.eq.s32.totalorder %v1671_v38, %v988_v56 }
  0xa4   :  { %v1323_v57 = vsel %vm1008_vm13, 1.0, %v1408_v53  ;;  %vm119_vm13 = vcmp.eq.s32.totalorder %v1671_v38, %v1683_v46 }
  0xa5   :  { %v1031_v58 = vpack.c.bf16 %v1323_v57, %v1322_v54  ;;  %1279 = vmatmul.msk.bf16.gmra.mxu0 %vm1278_vm12, %v1407_v42  ;;  %1295 = vmatmul.msk.bf16.gmra.mxu1 %vm1278_vm12, %v1407_v42 }
  0xa6   :  { %1311 = vmatmul.msk.bf16.gmra.mxu2 %vm1278_vm12, %v1407_v42  ;;  %vm120_vm12 = vcmp.eq.s32.totalorder %v1671_v38, %v1685_v48 }
  0xa7   :  { %1334 = vmatmul.msk.bf16.vlgmr.msra.gmra.mxu3 %vm1043_vm14, %v1031_v58 }
  0xa9   :  { %v994_v59 = vpop.permute.xlu1 %993 }
  0xaa   :  { %v991_v60 = vpop.permute.xlu0 %990  ;;  %vm1010_vm15 = vcmp.eq.s32.totalorder %v1671_v38, %v994_v59 }
  0xab   :  { %vm1009_vm0 = vcmp.eq.s32.totalorder %v1671_v38, %v991_v60  ;;  %v1325_v61 = vsel %vm1010_vm15, 1.0, %v1408_v53  ;;  %vm1284_vm15 = vmpackc.low %vm120_vm12, %vm119_vm13 }
  0xac   :  { %v1324_v62 = vsel %vm1009_vm0, 1.0, %v1408_v53  ;;  %vm124_vm0 = vcmp.eq.s32.totalorder %v1671_v38, %v108_v0 }
  0xad   :  { %v1032_v63 = vpack.c.bf16 %v1325_v61, %v1324_v62  ;;  %vm1288_vm2 = vmpackc.low %vm124_vm0, %vm123_vm1 }
  0xb1   :  { %v1003_v6 = vpop.permute.xlu1 %1002 }
  0xb2   :  { %v1000_v1 = vpop.permute.xlu0 %999  ;;  %vm1013_vm10 = vcmp.eq.s32.totalorder %v1671_v38, %v1003_v6 }
  0xb3   :  { %vm1012_vm4 = vcmp.eq.s32.totalorder %v1671_v38, %v1000_v1  ;;  %v1328_v8 = vsel %vm1013_vm10, 1.0, %v1408_v53 }
  0xb4   :  { %v1327_v3 = vsel %vm1012_vm4, 1.0, %v1408_v53  ;;  %v1034_v10 = vpack.c.bf16 %v1329_v9, %v1328_v8 }
  0xb5   :  { %1281 = vmatmul.msk.bf16.gmra.mxu0 %vm1280_vm3, %v1407_v42  ;;  %1297 = vmatmul.msk.bf16.gmra.mxu1 %vm1280_vm3, %v1407_v42  ;;  %v1033_v5 = vpack.c.bf16 %v1327_v3, %v1326_v4 }
  0xb6   :  { %1313 = vmatmul.msk.bf16.gmra.mxu2 %vm1280_vm3, %v1407_v42  ;;  %vm1108_vm3 = vcmask 785408  }
  0xb7   :  { %1335 = vmatmul.msk.bf16.gmra.mxu3 %vm1043_vm14, %v1032_v63 }
  0xc5   :  { %1283 = vmatmul.msk.bf16.gmra.mxu0 %vm1282_vm9, %v1407_v42  ;;  %1299 = vmatmul.msk.bf16.gmra.mxu1 %vm1282_vm9, %v1407_v42 }
  0xc6   :  { %1315 = vmatmul.msk.bf16.gmra.mxu2 %vm1282_vm9, %v1407_v42 }
  0xc7   :  { %1336 = vmatmul.msk.bf16.gmra.mxu3 %vm1043_vm14, %v1033_v5 }
  0xd5   :  { %1285 = vmatmul.msk.bf16.gmra.mxu0 %vm1284_vm15, %v1407_v42  ;;  %1301 = vmatmul.msk.bf16.gmra.mxu1 %vm1284_vm15, %v1407_v42 }
  0xd6   :  { %1317 = vmatmul.msk.bf16.gmra.mxu2 %vm1284_vm15, %v1407_v42 }
  0xd7   :  { %1337 = vmatmul.msk.bf16.gmra.mxu3 %vm1043_vm14, %v1034_v10  ;;  %vm1106_vm14 = vcmask 523264  }
  0xe5   :  { %1287 = vmatmul.msk.bf16.gmra.mxu0 %vm1692_vm8, %v1407_v42  ;;  %1303 = vmatmul.msk.bf16.gmra.mxu1 %vm1692_vm8, %v1407_v42 }
  0xe6   :  { %1319 = vmatmul.msk.bf16.gmra.mxu2 %vm1692_vm8, %v1407_v42  ;;  %vm1104_vm8 = vcmask 261120  }
  0xf5   :  { %1289 = vmatmul.msk.bf16.gmra.mxu0 %vm1288_vm2, %v1407_v42  ;;  %1305 = vmatmul.msk.bf16.gmra.mxu1 %vm1288_vm2, %v1407_v42 }
  0xf6   :  { %1321 = vmatmul.msk.bf16.gmra.mxu2 %vm1288_vm2, %v1407_v42 }
 0x102   :  { %v1744_v11 = vpop.f32.mrf.mxu0  ;;  %v1746_v12 = vpop.f32.mrf.mxu1 }
 0x109   :  { %v432_v13 = vpop.f32.mrf.mxu2 }
 0x10a   :  { %v1748_v14 = vpop.f32.mrf.mxu0  ;;  %v1750_v15 = vpop.f32.mrf.mxu1 }
 0x10b   :  { %624 = vrot.lane.b32.xlu2 %v1750_v15, %s1409_s3  ;;  %485 = vrot.lane.b32.xlu0 %v1748_v14, %s1409_s3 }
 0x111   :  { %v433_v16 = vpop.f32.mrf.mxu2 }
 0x112   :  { %806 = vrot.lane.b32.xlu1 %v433_v16, %s1409_s3  ;;  %v1757_v17 = vpop.f32.mrf.mxu0  ;;  %v1759_v18 = vpop.f32.mrf.mxu1 }
 0x113   :  { %626 = vrot.lane.b32.xlu0 %v1759_v18, %s1409_s3  ;;  %542 = vrot.lane.b32.xlu2 %v1757_v17, %s1410_s26 }
 0x119   :  { %v436_v19 = vpop.f32.mrf.mxu2 }
 0x11a   :  { %487 = vrot.lane.b32.xlu1 %v1757_v17, %s1409_s3  ;;  %v1767_v20 = vpop.f32.mrf.mxu0  ;;  %v1772_v21 = vpop.f32.mrf.mxu1 }
 0x11b   :  { %808 = vrot.lane.b32.xlu2 %v436_v19, %s1409_s3  ;;  %544 = vrot.lane.b32.xlu0 %v1767_v20, %s1410_s26 }
 0x121   :  { %v438_v22 = vpop.f32.mrf.mxu2 }
 0x122   :  { %677 = vrot.lane.b32.xlu1 %v1759_v18, %s1410_s26  ;;  %v1784_v23 = vpop.f32.mrf.mxu0  ;;  %v1791_v24 = vpop.f32.mrf.mxu1 }
 0x123   :  { %628 = vrot.lane.b32.xlu0 %v1772_v21, %s1409_s3  ;;  %489 = vrot.lane.b32.xlu2 %v1767_v20, %s1409_s3 }
 0x129   :  { %v1798_v25 = vpop.f32.mrf.mxu2 }
 0x12a   :  { %855 = vrot.lane.b32.xlu1 %v436_v19, %s1410_s26  ;;  %v1806_v26 = vpop.f32.mrf.mxu0  ;;  %v1814_v27 = vpop.f32.mrf.mxu1 }
 0x12b   :  { %810 = vrot.lane.b32.xlu0 %v438_v22, %s1409_s3  ;;  %679 = vrot.lane.b32.xlu2 %v1772_v21, %s1410_s26 }
 0x131   :  { %v1822_v28 = vpop.f32.mrf.mxu2 }
 0x132   :  { %546 = vrot.lane.b32.xlu1 %v1784_v23, %s1410_s26  ;;  %v1830_v29 = vpop.f32.mrf.mxu0  ;;  %v1838_v31 = vpop.f32.mrf.mxu1 }
 0x133   :  { %904 = vrot.lane.b32.xlu0 %v438_v22, %s1411_s27  ;;  %730 = vrot.lane.b32.xlu2 %v1772_v21, %s1411_s27 }
 0x139   :  { %v1846_v33 = vpop.f32.mrf.mxu2 }
 0x13a   :  { %681 = vrot.lane.b32.xlu1 %v1791_v24, %s1410_s26  ;;  %v1854_v35 = vpop.f32.mrf.mxu0  ;;  %v1856_v36 = vpop.f32.mrf.mxu1 }
 0x13b   :  { %857 = vrot.lane.b32.xlu2 %v438_v22, %s1410_s26  ;;  %491 = vrot.lane.b32.xlu0 %v1784_v23, %s1409_s3 }
 0x141   :  { %v1865_v41 = vpop.f32.mrf.mxu2 }
 0x142   :  { %812 = vrot.lane.b32.xlu1 %v1798_v25, %s1409_s3  ;;  %v1876_v47 = vpop.f32.mrf.mxu0  ;;  %v1885_v54 = vpop.f32.mrf.mxu1 }
 0x143   :  { %859 = vrot.lane.b32.xlu2 %v1798_v25, %s1410_s26  ;;  %630 = vrot.lane.b32.xlu0 %v1791_v24, %s1409_s3 }
 0x149   :  { %v1897_v63 = vpop.f32.mrf.mxu2 }
 0x14a   :  { %906 = vrot.lane.b32.xlu1 %v1798_v25, %s1411_s27  ;;  %v1909_v7 = vpop.f32.mrf.mxu0 }
 0x14b   :  { %732 = vrot.lane.b32.xlu0 %v1791_v24, %s1411_s27  ;;  %548 = vrot.lane.b32.xlu2 %v1806_v26, %s1410_s26 }
 0x152   :  { %493 = vrot.lane.b32.xlu1 %v1806_v26, %s1409_s3 }
 0x153   :  { %683 = vrot.lane.b32.xlu0 %v1814_v27, %s1410_s26  ;;  %632 = vrot.lane.b32.xlu2 %v1814_v27, %s1409_s3 }
 0x15a   :  { %734 = vrot.lane.b32.xlu1 %v1814_v27, %s1411_s27 }
 0x15b   :  { %861 = vrot.lane.b32.xlu0 %v1822_v28, %s1410_s26  ;;  %814 = vrot.lane.b32.xlu2 %v1822_v28, %s1409_s3 }
 0x162   :  { %908 = vrot.lane.b32.xlu1 %v1822_v28, %s1411_s27 }
 0x163   :  { %550 = vrot.lane.b32.xlu0 %v1830_v29, %s1410_s26  ;;  %495 = vrot.lane.b32.xlu2 %v1830_v29, %s1409_s3 }
 0x165   :  { %v625_v30 = vpop.permute.xlu2 %624 }
 0x166   :  { %v663_v55 = vadd.f32 %v625_v30, %v1744_v11 }
 0x16a   :  { %736 = vrot.lane.b32.xlu1 %v1838_v31, %s1411_s27 }
 0x16b   :  { %685 = vrot.lane.b32.xlu0 %v1838_v31, %s1410_s26  ;;  %634 = vrot.lane.b32.xlu2 %v1838_v31, %s1409_s3 }
 0x16d   :  { %v543_v32 = vpop.permute.xlu2 %542 }
 0x172   :  { %910 = vrot.lane.b32.xlu1 %v1846_v33, %s1411_s27 }
 0x173   :  { %863 = vrot.lane.b32.xlu0 %v1846_v33, %s1410_s26  ;;  %816 = vrot.lane.b32.xlu2 %v1846_v33, %s1409_s3 }
 0x175   :  { %v809_v34 = vpop.permute.xlu2 %808 }
 0x176   :  { %v843_v56 = vadd.f32 %v809_v34, %v1750_v15  ;;  %v1920_v15 = vpop.f32.mrf.mxu1 }
 0x17a   :  { %552 = vrot.lane.b32.xlu1 %v1854_v35, %s1410_s26 }
 0x17b   :  { %636 = vrot.lane.b32.xlu2 %v1856_v36, %s1409_s3  ;;  %497 = vrot.lane.b32.xlu0 %v1854_v35, %s1409_s3 }
 0x17d   :  { %v490_v37 = vpop.permute.xlu2 %489  ;;  %v486_v38 = vpop.permute.xlu0 %485 }
 0x17e   :  { %v527_v39 = vadd.f32 %v486_v38, %v1744_v11  ;;  %v529_v8 = vadd.f32 %v490_v37, %v1757_v17  ;;  %v1932_v37 = vpop.f32.mrf.mxu2 }
 0x180   :  { %v584_v40 = vadd.f32 %v543_v32, %v527_v39 }
 0x182   :  { %738 = vrot.lane.b32.xlu1 %v1856_v36, %s1411_s27 }
 0x183   :  { %818 = vrot.lane.b32.xlu2 %v1865_v41, %s1409_s3  ;;  %687 = vrot.lane.b32.xlu0 %v1856_v36, %s1410_s26 }
 0x184   :  { %v807_v42 = vpop.permute.xlu1 %806 }
 0x185   :  { %v680_v43 = vpop.permute.xlu2 %679  ;;  %v627_v44 = vpop.permute.xlu0 %626  ;;  %v842_v0 = vadd.f32 %v807_v42, %v1746_v12 }
 0x186   :  { %v664_v45 = vadd.f32 %v627_v44, %v1748_v14  ;;  %v1943_v42 = vpop.f32.mrf.mxu0 }
 0x188   :  { %v1874_v46 = vadd.f32 %v680_v43, %v664_v45  ;;  %v1945_v43 = vpop.f32.mrf.mxu1 }
 0x18a   :  { %912 = vrot.lane.b32.xlu1 %v1865_v41, %s1411_s27 }
 0x18b   :  { %865 = vrot.lane.b32.xlu0 %v1865_v41, %s1410_s26  ;;  %554 = vrot.lane.b32.xlu2 %v1876_v47, %s1410_s26 }
 0x18c   :  { %v488_v48 = vpop.permute.xlu1 %487 }
 0x18d   :  { %v528_v49 = vadd.f32 %v488_v48, %v1748_v14  ;;  %v731_v50 = vpop.permute.xlu2 %730  ;;  %v545_v51 = vpop.permute.xlu0 %544 }
 0x18f   :  { %v585_v52 = vadd.f32 %v545_v51, %v528_v49 }
 0x191   :  { %v598_v53 = vmax.f32 %v584_v40, %v585_v52 }
 0x192   :  { %499 = vrot.lane.b32.xlu1 %v1876_v47, %s1409_s3 }
 0x193   :  { %689 = vrot.lane.b32.xlu0 %v1885_v54, %s1410_s26  ;;  %638 = vrot.lane.b32.xlu2 %v1885_v54, %s1409_s3 }
 0x194   :  { %v678_v57 = vpop.permute.xlu1 %677 }
 0x195   :  { %v716_v58 = vadd.f32 %v678_v57, %v663_v55  ;;  %v858_v59 = vpop.permute.xlu2 %857  ;;  %v629_v60 = vpop.permute.xlu0 %628 }
 0x196   :  { %v892_v61 = vadd.f32 %v858_v59, %v843_v56  ;;  %v665_v16 = vadd.f32 %v629_v60, %v1757_v17  ;;  %v1959_v56 = vpop.f32.mrf.mxu2  ;;  %v1970_v59 = vpop.f32.mrf.mxu1 }
 0x197   :  { %v1895_v62 = vadd.f32 %v731_v50, %v716_v58 }
 0x19a   :  { %740 = vrot.lane.b32.xlu1 %v1885_v54, %s1411_s27 }
 0x19b   :  { %867 = vrot.lane.b32.xlu0 %v1897_v63, %s1410_s26  ;;  %820 = vrot.lane.b32.xlu2 %v1897_v63, %s1409_s3 }
 0x19c   :  { %v856_v1 = vpop.permute.xlu1 %855 }
 0x19d   :  { %v891_v2 = vadd.f32 %v856_v1, %v842_v0  ;;  %v860_v3 = vpop.permute.xlu2 %859  ;;  %v811_v4 = vpop.permute.xlu0 %810 }
 0x19e   :  { %v844_v5 = vadd.f32 %v811_v4, %v1759_v18  ;;  %v1985_v4 = vpop.f32.mrf.mxu2 }
 0x1a0   :  { %v1907_v6 = vadd.f32 %v860_v3, %v844_v5  ;;  %v1983_v3 = vpop.f32.mrf.mxu0 }
 0x1a2   :  { %914 = vrot.lane.b32.xlu1 %v1897_v63, %s1411_s27 }
 0x1a3   :  { %556 = vrot.lane.b32.xlu0 %v1909_v7, %s1410_s26  ;;  %501 = vrot.lane.b32.xlu2 %v1909_v7, %s1409_s3 }
 0x1a4   :  { %v547_v9 = vpop.permute.xlu1 %546 }
 0x1a5   :  { %v586_v10 = vadd.f32 %v547_v9, %v529_v8  ;;  %v549_v11 = vpop.permute.xlu2 %548  ;;  %v905_v12 = vpop.permute.xlu0 %904 }
 0x1a6   :  { %v940_v13 = vadd.f32 %v905_v12, %v891_v2 }
 0x1a7   :  { %v1918_v14 = vmax.f32 %v598_v53, %v586_v10 }
 0x1a8   :  { %v952_v51 = vadd.f32 %v940_v13, %v1798_v25  ;;  %v1998_v13 = vpop.f32.mrf.mxu3 }
 0x1aa   :  { %742 = vrot.lane.b32.xlu1 %v1920_v15, %s1411_s27 }
 0x1ab   :  { %691 = vrot.lane.b32.xlu0 %v1920_v15, %s1410_s26  ;;  %640 = vrot.lane.b32.xlu2 %v1920_v15, %s1409_s3 }
 0x1ac   :  { %v682_v18 = vpop.permute.xlu1 %681 }
 0x1ad   :  { %v718_v19 = vadd.f32 %v682_v18, %v665_v16  ;;  %v1929_v22 = vpop.permute.xlu2 %632  ;;  %v492_v30 = vpop.permute.xlu0 %491 }
 0x1ae   :  { %v530_v32 = vadd.f32 %v492_v30, %v1767_v20  ;;  %v2002_v18 = vpop.f32.mrf.mxu0 }
 0x1b0   :  { %v587_v34 = vadd.f32 %v549_v11, %v530_v32 }
 0x1b2   :  { %916 = vrot.lane.b32.xlu1 %v1932_v37, %s1411_s27  ;;  %v600_v17 = vmax.f32 %v1918_v14, %v587_v34 }
 0x1b3   :  { %869 = vrot.lane.b32.xlu0 %v1932_v37, %s1410_s26  ;;  %822 = vrot.lane.b32.xlu2 %v1932_v37, %s1409_s3 }
 0x1b4   :  { %v813_v38 = vpop.permute.xlu1 %812 }
 0x1b5   :  { %v1941_v39 = vpop.permute.xlu2 %814  ;;  %v631_v40 = vpop.permute.xlu0 %630  ;;  %v845_v60 = vadd.f32 %v813_v38, %v1772_v21 }
 0x1b6   :  { %v2015_v38 = vpop.f32.mrf.mxu3 }
 0x1ba   :  { %558 = vrot.lane.b32.xlu1 %v1943_v42, %s1410_s26 }
 0x1bb   :  { %642 = vrot.lane.b32.xlu2 %v1945_v43, %s1409_s3  ;;  %503 = vrot.lane.b32.xlu0 %v1943_v42, %s1409_s3 }
 0x1bc   :  { %v907_v44 = vpop.permute.xlu1 %906 }
 0x1bd   :  { %v941_v45 = vadd.f32 %v907_v44, %v892_v61  ;;  %v1953_v48 = vpop.permute.xlu2 %495  ;;  %v733_v49 = vpop.permute.xlu0 %732 }
 0x1be   :  { %v770_v50 = vadd.f32 %v733_v49, %v1874_v46  ;;  %v666_v46 = vadd.f32 %v631_v40, %v1767_v20  ;;  %v413_v40 = vpop.f32.mrf.mxu1 }
 0x1bf   :  { %v953_v52 = vadd.f32 %v941_v45, %v1822_v28 }
 0x1c0   :  { %v782_v53 = vmax.f32 %v1895_v62, %v770_v50 }
 0x1c1   :  { %v964_v55 = vmax.f32 %v952_v51, %v953_v52 }
 0x1c2   :  { %744 = vrot.lane.b32.xlu1 %v1945_v43, %s1411_s27 }
 0x1c3   :  { %824 = vrot.lane.b32.xlu2 %v1959_v56, %s1409_s3  ;;  %693 = vrot.lane.b32.xlu0 %v1945_v43, %s1410_s26 }
 0x1c4   :  { %v494_v57 = vpop.permute.xlu1 %493 }
 0x1c5   :  { %v1968_v25 = vpop.permute.xlu2 %634  ;;  %v684_v28 = vpop.permute.xlu0 %683  ;;  %v531_v21 = vadd.f32 %v494_v57, %v1784_v23 }
 0x1c6   :  { %v719_v58 = vadd.f32 %v684_v28, %v666_v46 }
 0x1ca   :  { %918 = vrot.lane.b32.xlu1 %v1959_v56, %s1411_s27 }
 0x1cb   :  { %644 = vrot.lane.b32.xlu2 %v1970_v59, %s1409_s3  ;;  %871 = vrot.lane.b32.xlu0 %v1959_v56, %s1410_s26 }
 0x1cc   :  { %v735_v61 = vpop.permute.xlu1 %734 }
 0x1cd   :  { %v771_v20 = vadd.f32 %v735_v61, %v718_v19  ;;  %v1979_v62 = vpop.permute.xlu2 %816  ;;  %v862_v0 = vpop.permute.xlu0 %861 }
 0x1ce   :  { %v894_v1 = vadd.f32 %v862_v0, %v845_v60  ;;  %v2039_v61 = vpop.f32.mrf.mxu0  ;;  %v668_v0 = vadd.f32 %v1968_v25, %v1806_v26 }
 0x1cf   :  { %v1981_v2 = vmax.f32 %v782_v53, %v771_v20  ;;  %v2025_v53 = vpop.f32.mrf.mxu2 }
 0x1d2   :  { %505 = vrot.lane.b32.xlu1 %v1983_v3, %s1409_s3 }
 0x1d3   :  { %826 = vrot.lane.b32.xlu2 %v1985_v4, %s1409_s3  ;;  %695 = vrot.lane.b32.xlu0 %v1970_v59, %s1410_s26 }
 0x1d4   :  { %v909_v5 = vpop.permute.xlu1 %908 }
 0x1d5   :  { %v942_v8 = vadd.f32 %v909_v5, %v1907_v6  ;;  %v1995_v9 = vpop.permute.xlu2 %636  ;;  %v551_v10 = vpop.permute.xlu0 %550  ;;  %v667_v6 = vadd.f32 %v1929_v22, %v1784_v23  ;;  %v846_v23 = vadd.f32 %v1941_v39, %v1791_v24 }
 0x1d6   :  { %v588_v11 = vadd.f32 %v551_v10, %v531_v21  ;;  %v2034_v24 = vpop.f32.mrf.mxu3 }
 0x1d7   :  { %v954_v12 = vadd.f32 %v942_v8, %v1846_v33 }
 0x1d8   :  { %v601_v14 = vmax.f32 %v600_v17, %v588_v11 }
 0x1d9   :  { %v2000_v16 = vmax.f32 %v964_v55, %v954_v12  ;;  %v532_v55 = vadd.f32 %v1953_v48, %v1806_v26  ;;  %v415_v48 = vpop.f32.mrf.mxu1  ;;  %v2054_v12 = vpop.f32.mrf.mxu2  ;;  %v847_v26 = vadd.f32 %v1979_v62, %v1814_v27  ;;  %v669_v27 = vadd.f32 %v1995_v9, %v1830_v29 }
 0x1da   :  { %746 = vrot.lane.b32.xlu1 %v1970_v59, %s1411_s27 }
 0x1db   :  { %873 = vrot.lane.b32.xlu0 %v1985_v4, %s1410_s26  ;;  %507 = vrot.lane.b32.xlu2 %v2002_v18, %s1409_s3 }
 0x1dc   :  { %v737_v33 = vpop.permute.xlu1 %736 }
 0x1dd   :  { %v772_v19 = vadd.f32 %v737_v33, %v719_v58  ;;  %v2012_v30 = vpop.permute.xlu2 %818  ;;  %v686_v32 = vpop.permute.xlu0 %685 }
 0x1de   :  { %v720_v34 = vadd.f32 %v686_v32, %v667_v6  ;;  %v1072_v8 = vpop.f32.mrf.mxu3 }
 0x1df   :  { %v784_v17 = vmax.f32 %v1981_v2, %v772_v19 }
 0x1e2   :  { %920 = vrot.lane.b32.xlu1 %v1985_v4, %s1411_s27 }
 0x1e3   :  { %697 = vrot.lane.b32.xlu0 %v413_v40, %s1410_s26  ;;  %646 = vrot.lane.b32.xlu2 %v413_v40, %s1409_s3 }
 0x1e4   :  { %v911_v22 = vpop.permute.xlu1 %910 }
 0x1e5   :  { %v943_v44 = vadd.f32 %v911_v22, %v894_v1  ;;  %v555_v45 = vpop.permute.xlu2 %554  ;;  %v864_v49 = vpop.permute.xlu0 %863 }
 0x1e6   :  { %v895_v50 = vadd.f32 %v864_v49, %v846_v23  ;;  %v1075_v32 = vpop.f32.mrf.mxu3  ;;  %v848_v49 = vadd.f32 %v2012_v30, %v1838_v31  ;;  %v1085_v30 = vmax.f32 %v1998_v13, %v2015_v38 }
 0x1e7   :  { %v955_v51 = vadd.f32 %v943_v44, %v1865_v41 }
 0x1e9   :  { %v966_v52 = vmax.f32 %v2000_v16, %v955_v51 }
 0x1ea   :  { %748 = vrot.lane.b32.xlu1 %v413_v40, %s1411_s27  ;;  %v418_v40 = vpop.f32.mrf.mxu1 }
 0x1eb   :  { %875 = vrot.lane.b32.xlu0 %v2025_v53, %s1410_s26  ;;  %828 = vrot.lane.b32.xlu2 %v2025_v53, %s1409_s3 }
 0x1ec   :  { %v553_v39 = vpop.permute.xlu1 %552 }
 0x1ed   :  { %v589_v46 = vadd.f32 %v553_v39, %v532_v55  ;;  %v2036_v41 = vpop.permute.xlu2 %638  ;;  %v498_v57 = vpop.permute.xlu0 %497 }
 0x1ee   :  { %v533_v28 = vadd.f32 %v498_v57, %v1830_v29  ;;  %v670_v13 = vadd.f32 %v2036_v41, %v1854_v35 }
 0x1ef   :  { %v602_v58 = vmax.f32 %v601_v14, %v589_v46 }
 0x1f0   :  { %v590_v60 = vadd.f32 %v555_v45, %v533_v28  ;;  %v2073_v45 = vpop.f32.mrf.mxu2 }
 0x1f2   :  { %922 = vrot.lane.b32.xlu1 %v2025_v53, %s1411_s27  ;;  %v2043_v20 = vmax.f32 %v602_v58, %v590_v60  ;;  %v420_v39 = vpop.f32.mrf.mxu1 }
 0x1f3   :  { %648 = vrot.lane.b32.xlu2 %v415_v48, %s1409_s3  ;;  %509 = vrot.lane.b32.xlu0 %v2039_v61, %s1409_s3 }
 0x1f4   :  { %v739_v1 = vpop.permute.xlu1 %738 }
 0x1f5   :  { %v773_v2 = vadd.f32 %v739_v1, %v720_v34  ;;  %v2050_v21 = vpop.permute.xlu2 %820  ;;  %v688_v5 = vpop.permute.xlu0 %687 }
 0x1f6   :  { %v721_v10 = vadd.f32 %v688_v5, %v668_v0  ;;  %v369_v34 = vpop.f32.mrf.mxu0  ;;  %v1086_v0 = vmax.f32 %v1085_v30, %v2034_v24 }
 0x1f7   :  { %v2052_v11 = vmax.f32 %v784_v17, %v773_v2 }
 0x1f8   :  { %v1087_v5 = vmax.f32 %v1086_v0, %v1072_v8 }
 0x1fa   :  { %750 = vrot.lane.b32.xlu1 %v415_v48, %s1411_s27 }
 0x1fb   :  { %877 = vrot.lane.b32.xlu2 %v2054_v12, %s1410_s26  ;;  %699 = vrot.lane.b32.xlu0 %v415_v48, %s1410_s26 }
 0x1fc   :  { %v913_v25 = vpop.permute.xlu1 %912 }
 0x1fd   :  { %v944_v14 = vadd.f32 %v913_v25, %v895_v50  ;;  %v2062_v16 = vpop.permute.xlu2 %501  ;;  %v866_v6 = vpop.permute.xlu0 %865 }
 0x1fe   :  { %v896_v33 = vadd.f32 %v866_v6, %v847_v26  ;;  %v1088_v26 = vmax.f32 %v1087_v5, %v1075_v32  ;;  %v849_v32 = vadd.f32 %v2050_v21, %v1856_v36 }
 0x1ff   :  { %v956_v19 = vadd.f32 %v944_v14, %v1897_v63  ;;  %v1077_v63 = vpop.f32.mrf.mxu3 }
 0x200   :  { %v1089_v25 = vmax.f32 %v1088_v26, %v1077_v63 }
 0x201   :  { %v2065_v17 = vmax.f32 %v966_v52, %v956_v19 }
 0x202   :  { %511 = vrot.lane.b32.xlu1 %v369_v34, %s1409_s3 }
 0x203   :  { %752 = vrot.lane.b32.xlu2 %v418_v40, %s1411_s27  ;;  %924 = vrot.lane.b32.xlu0 %v2054_v12, %s1411_s27 }
 0x204   :  { %v500_v62 = vpop.permute.xlu1 %499 }
 0x205   :  { %v641_v23 = vpop.permute.xlu2 %640  ;;  %v690_v22 = vpop.permute.xlu0 %689  ;;  %v534_v57 = vadd.f32 %v500_v62, %v1854_v35 }
 0x206   :  { %v722_v44 = vadd.f32 %v690_v22, %v669_v27  ;;  %v535_v22 = vadd.f32 %v2062_v16, %v1876_v47  ;;  %v671_v36 = vadd.f32 %v641_v23, %v1876_v47 }
 0x207   :  { %v1080_v46 = vpop.f32.mrf.mxu3 }
 0x208   :  { %v1090_v6 = vmax.f32 %v1089_v25, %v1080_v46 }
 0x20a   :  { %701 = vrot.lane.b32.xlu1 %v418_v40, %s1410_s26 }
 0x20b   :  { %560 = vrot.lane.b32.xlu2 %v1983_v3, %s1410_s26  ;;  %926 = vrot.lane.b32.xlu0 %v2073_v45, %s1411_s27 }
 0x20c   :  { %v741_v50 = vpop.permute.xlu1 %740 }
 0x20d   :  { %v774_v29 = vadd.f32 %v741_v50, %v721_v10  ;;  %v2082_v9 = vpop.permute.xlu2 %822  ;;  %v868_v51 = vpop.permute.xlu0 %867 }
 0x20e   :  { %v897_v52 = vadd.f32 %v868_v51, %v848_v49 }
 0x20f   :  { %v786_v55 = vmax.f32 %v2052_v11, %v774_v29  ;;  %v371_v11 = vpop.f32.mrf.mxu0 }
 0x212   :  { %754 = vrot.lane.b32.xlu1 %v420_v39, %s1411_s27 }
 0x213   :  { %562 = vrot.lane.b32.xlu0 %v2002_v18, %s1410_s26  ;;  %566 = vrot.lane.b32.xlu2 %v369_v34, %s1410_s26 }
 0x214   :  { %v915_v31 = vpop.permute.xlu1 %914 }
 0x215   :  { %v945_v28 = vadd.f32 %v915_v31, %v896_v33  ;;  %v2092_v58 = vpop.permute.xlu2 %642  ;;  %v557_v60 = vpop.permute.xlu0 %556 }
 0x216   :  { %v591_v48 = vadd.f32 %v557_v60, %v534_v57 }
 0x217   :  { %v957_v1 = vadd.f32 %v945_v28, %v1932_v37 }
 0x218   :  { %v604_v2 = vmax.f32 %v2043_v20, %v591_v48  ;;  %v1082_v20 = vpop.f32.mrf.mxu3 }
 0x219   :  { %v968_v10 = vmax.f32 %v2065_v17, %v957_v1  ;;  %v1091_v19 = vmax.f32 %v1090_v6, %v1082_v20 }
 0x21a   :  { %564 = vrot.lane.b32.xlu1 %v2039_v61, %s1410_s26 }
 0x21b   :  { %568 = vrot.lane.b32.xlu0 %v371_v11, %s1410_s26 }
 0x21c   :  { %v743_v38 = vpop.permute.xlu1 %742 }
 0x21d   :  { %v775_v24 = vadd.f32 %v743_v38, %v722_v44  ;;  %v2103_v14 = vpop.permute.xlu2 %824  ;;  %v692_v37 = vpop.permute.xlu0 %691 }
 0x21e   :  { %v723_v8 = vadd.f32 %v692_v37, %v670_v13 }
 0x21f   :  { %v787_v33 = vmax.f32 %v786_v55, %v775_v24  ;;  %v672_v24 = vadd.f32 %v2092_v58, %v1909_v7  ;;  %v851_v58 = vadd.f32 %v2103_v14, %v1920_v15  ;;  %v1127_v14 = vld [vmem:[#allocation2 + $0x58] sm:$0xff] }
 0x223   :  { %1101 = vrot.lane.b32.xlu0 %v1091_v19, %s1409_s3 }
 0x224   :  { %v917_v34 = vpop.permute.xlu1 %916 }
 0x225   :  { %v946_v17 = vadd.f32 %v917_v34, %v897_v52  ;;  %v2108_v40 = vpop.permute.xlu2 %644  ;;  %v870_v35 = vpop.permute.xlu0 %869 }
 0x226   :  { %v898_v41 = vadd.f32 %v870_v35, %v849_v32  ;;  %v673_v15 = vadd.f32 %v2108_v40, %v1943_v42 }
 0x227   :  { %v958_v27 = vadd.f32 %v946_v17, %v1959_v56 }
 0x229   :  { %v969_v62 = vmax.f32 %v968_v10, %v958_v27  ;;  %v850_v10 = vadd.f32 %v2082_v9, %v1885_v54 }
 0x22c   :  { %v559_v44 = vpop.permute.xlu1 %558 }
 0x22d   :  { %v592_v63 = vadd.f32 %v559_v44, %v535_v22  ;;  %v827_v49 = vpop.permute.xlu2 %826  ;;  %v504_v50 = vpop.permute.xlu0 %503 }
 0x22e   :  { %v536_v54 = vadd.f32 %v504_v50, %v1909_v7 }
 0x22f   :  { %v2113_v29 = vmax.f32 %v604_v2, %v592_v63 }
 0x234   :  { %v745_v21 = vpop.permute.xlu1 %744 }
 0x235   :  { %v776_v51 = vadd.f32 %v745_v21, %v723_v8  ;;  %v2116_v52 = vpop.permute.xlu2 %507  ;;  %v694_v55 = vpop.permute.xlu0 %693  ;;  %v1130_v21 = vld [vmem:[#allocation2 + $0x70] sm:$0xff] }
 0x236   :  { %v724_v39 = vadd.f32 %v694_v55, %v671_v36  ;;  %v1131_v36 = vld [vmem:[#allocation2 + $0x78] sm:$0xff] }
 0x237   :  { %v788_v46 = vmax.f32 %v787_v33, %v776_v51  ;;  %1136 = vmatpush.msrb.mxu3 %v1131_v36  ;;  %v1129_v51 = vld [vmem:[#allocation2 + $0x68] sm:$0xff] }
 0x239   :  { %1137 = vmatpush.msrb.mxu3 %v1130_v21 }
 0x23b   :  { %1138 = vmatpush.msrb.mxu3 %v1129_v51 }
 0x23c   :  { %v919_v56 = vpop.permute.xlu1 %918 }
 0x23d   :  { %v947_v57 = vadd.f32 %v919_v56, %v898_v41  ;;  %v647_v31 = vpop.permute.xlu2 %646  ;;  %v872_v30 = vpop.permute.xlu0 %871 }
 0x23e   :  { %v899_v11 = vadd.f32 %v872_v30, %v850_v10 }
 0x23f   :  { %v959_v16 = vadd.f32 %v947_v57, %v1985_v4 }
 0x241   :  { %v970_v28 = vmax.f32 %v969_v62, %v959_v16  ;;  %v852_v62 = vadd.f32 %v827_v49, %v1945_v43  ;;  %v674_v43 = vadd.f32 %v647_v31, %v1983_v3 }
 0x244   :  { %v2119_v60 = vpop.permute.xlu1 %505 }
 0x245   :  { %v829_v48 = vpop.permute.xlu2 %828  ;;  %v696_v0 = vpop.permute.xlu0 %695 }
 0x246   :  { %v725_v20 = vadd.f32 %v696_v0, %v672_v24  ;;  %v1126_v0 = vld [vmem:[#allocation2 + $0x50] sm:$0xff] }
 0x24c   :  { %v747_v1 = vpop.permute.xlu1 %746 }
 0x24d   :  { %v777_v47 = vadd.f32 %v747_v1, %v724_v39  ;;  %v2121_v23 = vpop.permute.xlu2 %648  ;;  %v874_v2 = vpop.permute.xlu0 %873  ;;  %v1128_v39 = vld [vmem:[#allocation2 + $0x60] sm:$0xff] }
 0x24e   :  { %v900_v22 = vadd.f32 %v874_v2, %v851_v58  ;;  %1139 = vmatpush.msrb.mxu3 %v1128_v39  ;;  %v675_v31 = vadd.f32 %v2121_v23, %v2002_v18  ;;  %v538_v23 = vadd.f32 %v2116_v52, %v1983_v3  ;;  %v1121_v58 = vld [vmem:[#allocation2 + $0x28] sm:$0xff]  ;;  %v1120_v3 = vld [vmem:[#allocation2 + $0x20] sm:$0xff]  ;;  %v1119_v52 = vld [vmem:[#allocation2 + $0x18] sm:$0xff] }
 0x24f   :  { %v2123_v5 = vmax.f32 %v788_v46, %v777_v47  ;;  %v1125_v47 = vld [vmem:[#allocation2 + $0x48] sm:$0xff] }
 0x250   :  { %1140 = vmatpush.msrb.mxu3 %v1127_v14 }
 0x252   :  { %1141 = vmatpush.msrb.mxu3 %v1126_v0 }
 0x254   :  { %v921_v26 = vpop.permute.xlu1 %920  ;;  %1142 = vmatpush.msrb.mxu3 %v1125_v47 }
 0x255   :  { %v948_v13 = vadd.f32 %v921_v26, %v899_v11  ;;  %v878_v38 = vpop.permute.xlu2 %877  ;;  %v698_v4 = vpop.permute.xlu0 %697 }
 0x256   :  { %v726_v30 = vadd.f32 %v698_v4, %v673_v15 }
 0x257   :  { %v960_v25 = vadd.f32 %v948_v13, %v2025_v53  ;;  %v537_v13 = vadd.f32 %v2119_v60, %v1943_v42 }
 0x259   :  { %v971_v37 = vmax.f32 %v970_v28, %v960_v25 }
 0x25c   :  { %v749_v8 = vpop.permute.xlu1 %748 }
 0x25d   :  { %v778_v6 = vadd.f32 %v749_v8, %v725_v20  ;;  %v753_v33 = vpop.permute.xlu2 %752  ;;  %v876_v19 = vpop.permute.xlu0 %875 }
 0x25e   :  { %v901_v7 = vadd.f32 %v876_v19, %v852_v62  ;;  %v1118_v62 = vld [vmem:[#allocation2 + $0x10] sm:$0xff] }
 0x25f   :  { %v790_v32 = vmax.f32 %v2123_v5, %v778_v6 }
 0x264   :  { %v923_v9 = vpop.permute.xlu1 %922 }
 0x265   :  { %v561_v34 = vpop.permute.xlu2 %560  ;;  %v2132_v17 = vpop.permute.xlu0 %509  ;;  %v949_v50 = vadd.f32 %v923_v9, %v900_v22  ;;  %v1375_v22 = vld [vmem:[%s2168_s4] ss:$0 sm:$0xff] }
 0x266   :  { %v593_v35 = vadd.f32 %v561_v34, %v536_v54  ;;  %v539_v42 = vadd.f32 %v2132_v17, %v2002_v18  ;;  %v1117_v18 = vld [vmem:[#allocation2 + $0x8] sm:$0xff]  ;;  %v1116_v17 = vld [vmem:[#allocation2] sm:$0xff] }
 0x267   :  { %v961_v46 = vadd.f32 %v949_v50, %v2054_v12  ;;  %v468_v12 = vpop.f32.mrf.mxu2 }
 0x268   :  { %v606_v53 = vmax.f32 %v2113_v29, %v593_v35  ;;  %v853_v29 = vadd.f32 %v829_v48, %v1970_v59 }
 0x269   :  { %v972_v1 = vmax.f32 %v971_v37, %v961_v46 }
 0x26a   :  { %v902_v49 = vadd.f32 %v878_v38, %v853_v29 }
 0x26c   :  { %v751_v41 = vpop.permute.xlu1 %750 }
 0x26d   :  { %v700_v27 = vpop.permute.xlu0 %699  ;;  %v779_v48 = vadd.f32 %v751_v41, %v726_v30  ;;  %v567_v6 = vpop.permute.xlu2 %566 }
 0x26e   :  { %v727_v16 = vadd.f32 %v700_v27, %v674_v43  ;;  %v1122_v27 = vld [vmem:[#allocation2 + $0x30] sm:$0xff] }
 0x26f   :  { %v791_v11 = vmax.f32 %v790_v32, %v779_v48  ;;  %v596_v32 = vadd.f32 %v567_v6, %v539_v42 }
 0x270   :  { %v780_v5 = vadd.f32 %v753_v33, %v727_v16 }
 0x272   :  { %v792_v25 = vmax.f32 %v791_v11, %v780_v5 }
 0x274   :  { %v512_v44 = vpop.permute.xlu1 %511 }
 0x275   :  { %v925_v63 = vpop.permute.xlu0 %924  ;;  %v540_v54 = vadd.f32 %v512_v44, %v2039_v61 }
 0x276   :  { %v950_v55 = vadd.f32 %v925_v63, %v901_v7 }
 0x278   :  { %v962_v56 = vadd.f32 %v950_v55, %v2073_v45  ;;  %v1124_v45 = vld [vmem:[#allocation2 + $0x40] sm:$0xff] }
 0x279   :  { %1143 = vmatpush.msrb.mxu3 %v1124_v45  ;;  %v1376_v55 = vld [vmem:[%s2170_s6] ss:$0 sm:$0xff] }
 0x27a   :  { %v973_v2 = vmax.f32 %v972_v1, %v962_v56 }
 0x27c   :  { %v702_v57 = vpop.permute.xlu1 %701 }
 0x27d   :  { %v927_v28 = vpop.permute.xlu0 %926  ;;  %v728_v26 = vadd.f32 %v702_v57, %v675_v31 }
 0x27e   :  { %v951_v59 = vadd.f32 %v927_v28, %v902_v49 }
 0x280   :  { %v963_v40 = vadd.f32 %v951_v59, %v468_v12 }
 0x282   :  { %v974_v10 = vmax.f32 %v973_v2, %v963_v40 }
 0x284   :  { %v755_v38 = vpop.permute.xlu1 %754  ;;  %1097 = vrot.lane.b32.xlu2 %v974_v10, %s1409_s3 }
 0x285   :  { %v781_v4 = vadd.f32 %v755_v38, %v728_v26  ;;  %v563_v24 = vpop.permute.xlu0 %562 }
 0x286   :  { %v594_v37 = vadd.f32 %v563_v24, %v537_v13 }
 0x287   :  { %v793_v20 = vmax.f32 %v792_v25, %v781_v4 }
 0x288   :  { %v607_v8 = vmax.f32 %v606_v53, %v594_v37  ;;  %v1123_v53 = vld [vmem:[#allocation2 + $0x38] sm:$0xff] }
 0x289   :  { %1093 = vrot.lane.b32.xlu1 %v793_v20, %s1410_s26  ;;  %1144 = vmatpush.msrb.mxu3 %v1123_v53 }
 0x28b   :  { %1145 = vmatpush.msrb.mxu3 %v1122_v27 }
 0x28c   :  { %v565_v33 = vpop.permute.xlu1 %564 }
 0x28d   :  { %v595_v60 = vadd.f32 %v565_v33, %v538_v23  ;;  %v569_v19 = vpop.permute.xlu0 %568  ;;  %1146 = vmatpush.msrb.mxu3 %v1121_v58 }
 0x28e   :  { %v597_v35 = vadd.f32 %v569_v19, %v540_v54 }
 0x28f   :  { %v608_v9 = vmax.f32 %v607_v8, %v595_v60  ;;  %1147 = vmatpush.msrb.mxu3 %v1120_v3 }
 0x291   :  { %v609_v34 = vmax.f32 %v608_v9, %v596_v32  ;;  %1148 = vmatpush.msrb.mxu3 %v1119_v52 }
 0x293   :  { %v610_v41 = vmax.f32 %v609_v34, %v597_v35  ;;  %1149 = vmatpush.msrb.mxu3 %v1118_v62 }
 0x295   :  { %1150 = vmatpush.msrb.mxu3 %v1117_v18  ;;  %v1102_v36 = vpop.permute.xlu0 %1101 }
 0x297   :  { %1151 = vmatpush.msrb.mxu3 %v1116_v17 }
 0x2de   :  { %v1098_v44 = vpop.permute.xlu2 %1097 }
 0x2fb   :  { %v1094_v61 = vpop.permute.xlu1 %1093 }
 0x2fc   :  { %v1105_v63 = vsel %vm1104_vm8, %v610_v41, %v1094_v61 }
 0x2fd   :  { %v1107_v21 = vsel %vm1106_vm14, %v1105_v63, %v1098_v44 }
 0x2fe   :  { %v1109_v7 = vsel %vm1108_vm3, %v1107_v21, %v1102_v36 }
 0x2ff   :  { %v1114_v50 = vadd.f32 %v1375_v22, %v1109_v7 }
 0x301   :  { %v1115_v51 = vmax.f32 %v1114_v50, 0.0 }
 0x303   :  { %1152 = vmatmul.f32.vlgmr.msrb.gmra.mxu3 %v1115_v51 }
 0x386   :  { %v1153_v39 = vpop.f32.mrf.mxu3 }
 0x387   :  { %v1154_v29 = vadd.f32 %v1376_v55, %v1153_v39 }
 0x389   :  { %1156 = vst [vmem:[%s2171_s7] sm:$0xff] %v1154_v29 }
 0x38a   :  { %1161 = vsyncpa [#allocation3], 1 }

</bundles_post_ra>
